<compile_context>
chip_gen: v5e
topology: v5e:2x2
jax: 0.10.0
libtpu: 0.0.40
codegen_flags: <defaults>
</compile_context>

<pallas_src>
import functools

import jax
import jax.numpy as jnp
from jax import lax
from jax.experimental import pallas as pl
from jax.experimental.pallas import tpu as pltpu

# ---- "cfg" equivalent (deterministic, in-script) ---------------------------
USE_CONST_MULTIPLICATION = True
CONST = 2.5  # cfg.const


def _round_up(x, m):
    return (x + m - 1) // m * m


def _linear_kernel(x_ref, w_ref, b_ref, o_ref, acc_ref, *, const, use_const):
    # x_ref: (bm, bk) bf16   w_ref: (output_dim, bk) bf16   b_ref: (1, output_dim) f32
    # o_ref: (bm, output_dim) f32   acc_ref: (bm, output_dim) f32 scratch
    k = pl.program_id(1)

    @pl.when(k == 0)
    def _():
        acc_ref[...] = jnp.zeros_like(acc_ref)

    # Contract x (bm, bk) with W (output_dim, bk) over the K axis -> (bm, output_dim).
    # No transposed copy of W is ever materialized; MXU accumulates in f32.
    acc_ref[...] += lax.dot_general(
        x_ref[...], w_ref[...],
        dimension_numbers=(((1,), (1,)), ((), ())),
        preferred_element_type=jnp.float32)

    @pl.when(k == pl.num_programs(1) - 1)
    def _():
        out = acc_ref[...] + b_ref[...]          # f32 epilogue (v5e-safe)
        if use_const:
            out = out * const                    # ConstMultiplication.apply forward
        o_ref[...] = out.astype(o_ref.dtype)


def logistic_regression_forward(x, weight, bias, *, const=CONST,
                                use_const=USE_CONST_MULTIPLICATION,
                                block_m=512, block_k=512):
    """x: any shape whose trailing dims flatten to input_dim (row-major, like
    torch's x.view(-1, input_dim)).  weight: (output_dim, input_dim) like
    torch.nn.Linear; bias: (output_dim,)."""
    output_dim, input_dim = weight.shape

    # Flatten exactly like x.view(-1, input_dim).
    x2d = x.reshape(-1, input_dim)
    m = x2d.shape[0]

    # --- tile sizing -------------------------------------------------------
    # M tile: biggest requested tile, clamped to the (8-rounded) batch size.
    bm = min(block_m, _round_up(m, 8))
    bm = max(bm, 8)
    m_pad = _round_up(m, bm)

    # K tile: if K fits in one tile, use it whole (full-dim lane block is legal
    # even when K % 128 != 0).  Otherwise tile K in 128-aligned chunks and pad.
    if input_dim <= block_k:
        bk = input_dim
        k_pad = input_dim
    else:
        bk = _round_up(block_k, 128)
        k_pad = _round_up(input_dim, bk)

    # --- operand prep (bf16 matmul operands, f32 bias / accum) -------------
    x_bf = x2d.astype(jnp.bfloat16)
    w_bf = weight.astype(jnp.bfloat16)
    b2d = bias.astype(jnp.float32).reshape(1, output_dim)

    if m_pad != m or k_pad != input_dim:
        x_bf = jnp.pad(x_bf, ((0, m_pad - m), (0, k_pad - input_dim)))
    if k_pad != input_dim:
        # TODO(synk): for very large input_dim, pre-pad the weight once outside
        # the jitted forward to avoid this per-call HBM copy.
        w_bf = jnp.pad(w_bf, ((0, 0), (0, k_pad - input_dim)))

    grid = (m_pad // bm, k_pad // bk)

    # --- VMEM budget (double-buffered inputs/outputs + accumulator) --------
    n_lanes = _round_up(output_dim, 128)
    vmem_bytes = (
        2 * bm * bk * 2 +                              # x tiles (bf16, 2 bufs)
        2 * _round_up(output_dim, 8) * bk * 2 +        # w tiles (bf16, 2 bufs)
        2 * 8 * n_lanes * 4 +                          # bias (padded)
        2 * bm * n_lanes * 4 +                         # out tiles (f32, 2 bufs)
        bm * n_lanes * 4                               # accumulator scratch
    )
    vmem_limit = min(max(2 * vmem_bytes + (4 << 20), 16 << 20), 56 << 20)

    kernel = functools.partial(_linear_kernel, const=const, use_const=use_const)

    out = pl.pallas_call(
        kernel,
        out_shape=jax.ShapeDtypeStruct((m_pad, output_dim), jnp.float32),
        grid_spec=pltpu.PrefetchScalarGridSpec(
            num_scalar_prefetch=0,
            grid=grid,
            in_specs=[
                pl.BlockSpec((bm, bk), lambda i, k: (i, k)),            # x
                pl.BlockSpec((output_dim, bk), lambda i, k: (0, k)),    # W (N, K)
                pl.BlockSpec((1, output_dim), lambda i, k: (0, 0)),     # bias
            ],
            out_specs=pl.BlockSpec((bm, output_dim), lambda i, k: (i, 0)),
            scratch_shapes=[pltpu.VMEM((bm, output_dim), jnp.float32)],
        ),
        compiler_params=pltpu.CompilerParams(
            dimension_semantics=("parallel", "arbitrary"),
            vmem_limit_bytes=int(vmem_limit)),
    )(x_bf, w_bf, b2d)

    return out[:m]


if __name__ == "__main__":
    key = jax.random.PRNGKey(0)
    kx, kw, kb = jax.random.split(key, 3)

    # Small shapes: NCHW input (8, 4, 8, 8) -> input_dim = 4*8*8 = 256
    batch, C, H, W = 8, 4, 8, 8
    input_dim = C * H * W
    output_dim = 32

    x = jax.random.normal(kx, (batch, C, H, W), dtype=jnp.float32)

    # torch.nn.Linear default init: U(-1/sqrt(in), 1/sqrt(in)) for weight and bias
    bound = 1.0 / (input_dim ** 0.5)
    weight = jax.random.uniform(kw, (output_dim, input_dim),
                                minval=-bound, maxval=bound, dtype=jnp.float32)
    bias = jax.random.uniform(kb, (output_dim,),
                              minval=-bound, maxval=bound, dtype=jnp.float32)

    out = logistic_regression_forward(x, weight, bias)
    out = jax.block_until_ready(out)

    # Reference check: model the bf16 operand quantization (f32 accumulation),
    # which is exactly what the MXU computes.
    x2d = x.reshape(-1, input_dim)
    xq = x2d.astype(jnp.bfloat16).astype(jnp.float32)
    wq = weight.astype(jnp.bfloat16).astype(jnp.float32)
    ref = xq @ wq.T + bias
    if USE_CONST_MULTIPLICATION:
        ref = ref * CONST

    # Also sanity-check against the full-f32 reference with loose tolerance.
    ref_f32 = x2d @ weight.T + bias
    if USE_CONST_MULTIPLICATION:
        ref_f32 = ref_f32 * CONST

    assert out.shape == (batch, output_dim)
    assert jnp.allclose(out, ref, atol=1e-3, rtol=1e-3)
    assert jnp.allclose(out, ref_f32, atol=5e-2, rtol=5e-2)

    print("KERNEL_OK")
</pallas_src>

<mosaic_0001>
module attributes {stable_mosaic.version = 11 : i64} {
  func.func @_linear_kernel(%arg0: i32, %arg1: i32, %arg2: memref<8x256xbf16, #tpu.memory_space<vmem>>, %arg3: memref<32x256xbf16, #tpu.memory_space<vmem>>, %arg4: memref<1x32xf32, #tpu.memory_space<vmem>>, %arg5: memref<8x32xf32, #tpu.memory_space<vmem>>, %arg6: memref<8x32xf32, #tpu.memory_space<vmem>>) attributes {dimension_semantics = [#tpu.dimension_semantics<parallel>, #tpu.dimension_semantics<arbitrary>], iteration_bounds = array<i64: 1, 1>, scalar_prefetch = 0 : i64, scratch_operands = 1 : i64, tpu.core_type = #tpu.core_type<tc>, window_params = [{transform_indices = @transform_0, window_bounds = array<i64: 8, 256>}, {transform_indices = @transform_1, window_bounds = array<i64: 32, 256>}, {pipeline_mode = #tpu.pipeline_mode<synchronous>, transform_indices = @transform_2, window_bounds = array<i64: 1, 32>}, {transform_indices = @transform_3, window_bounds = array<i64: 8, 32>}]} {
    %c0_i32 = arith.constant 0 : i32
    %0 = arith.cmpi eq, %arg1, %c0_i32 : i32
    %1 = arith.extui %0 : i1 to i32
    %c0_i32_0 = arith.constant 0 : i32
    %2 = arith.cmpi ne, %1, %c0_i32_0 : i32
    scf.if %2 {
      %cst_10 = arith.constant 0.000000e+00 : f32
      %12 = vector.broadcast %cst_10 : f32 to vector<8x32xf32>
      %c0_11 = arith.constant 0 : index
      %c0_12 = arith.constant 0 : index
      %13 = vector.load %arg6[%c0_11, %c0_12] : memref<8x32xf32, #tpu.memory_space<vmem>>, vector<8x32xf32>
      tpu.vector_store %arg6[%c0_11, %c0_12], %12 {strides = array<i32>} : memref<8x32xf32, #tpu.memory_space<vmem>>, vector<8x32xf32>,
    } else {
    }
    %c0 = arith.constant 0 : index
    %c0_1 = arith.constant 0 : index
    %3 = vector.load %arg6[%c0, %c0_1] : memref<8x32xf32, #tpu.memory_space<vmem>>, vector<8x32xf32>
    %c0_2 = arith.constant 0 : index
    %c0_3 = arith.constant 0 : index
    %4 = vector.load %arg2[%c0_2, %c0_3] : memref<8x256xbf16, #tpu.memory_space<vmem>>, vector<8x256xbf16>
    %c0_4 = arith.constant 0 : index
    %c0_5 = arith.constant 0 : index
    %5 = vector.load %arg3[%c0_4, %c0_5] : memref<32x256xbf16, #tpu.memory_space<vmem>>, vector<32x256xbf16>
    %cst = arith.constant dense<0.000000e+00> : vector<8x32xf32>
    %6 = tpu.matmul %4, %5, %cst {dimension_numbers = #tpu.dot_dimension_numbers<[1], [1], [0], [0], [0, 0, 1, 0], [], []>} : vector<8x256xbf16>, vector<32x256xbf16>, vector<8x32xf32> -> vector<8x32xf32>
    %7 = arith.addf %3, %6 : vector<8x32xf32>
    %c0_6 = arith.constant 0 : index
    %c0_7 = arith.constant 0 : index
    %8 = vector.load %arg6[%c0_6, %c0_7] : memref<8x32xf32, #tpu.memory_space<vmem>>, vector<8x32xf32>
    tpu.vector_store %arg6[%c0_6, %c0_7], %7 {strides = array<i32>} : memref<8x32xf32, #tpu.memory_space<vmem>>, vector<8x32xf32>,
    %c0_i32_8 = arith.constant 0 : i32
    %9 = arith.cmpi eq, %arg1, %c0_i32_8 : i32
    %10 = arith.extui %9 : i1 to i32
    %c0_i32_9 = arith.constant 0 : i32
    %11 = arith.cmpi ne, %10, %c0_i32_9 : i32
    scf.if %11 {
      %c0_10 = arith.constant 0 : index
      %c0_11 = arith.constant 0 : index
      %12 = vector.load %arg6[%c0_10, %c0_11] : memref<8x32xf32, #tpu.memory_space<vmem>>, vector<8x32xf32>
      %c0_12 = arith.constant 0 : index
      %c0_13 = arith.constant 0 : index
      %13 = vector.load %arg4[%c0_12, %c0_13] : memref<1x32xf32, #tpu.memory_space<vmem>>, vector<1x32xf32>
      %14 = vector.broadcast %13 : vector<1x32xf32> to vector<8x32xf32>
      %15 = arith.addf %12, %14 : vector<8x32xf32>
      %cst_14 = arith.constant 2.500000e+00 : f32
      %16 = vector.broadcast %cst_14 : f32 to vector<8x32xf32>
      %17 = arith.mulf %15, %16 : vector<8x32xf32>
      %c0_15 = arith.constant 0 : index
      %c0_16 = arith.constant 0 : index
      %18 = vector.load %arg5[%c0_15, %c0_16] : memref<8x32xf32, #tpu.memory_space<vmem>>, vector<8x32xf32>
      tpu.vector_store %arg5[%c0_15, %c0_16], %17 {strides = array<i32>} : memref<8x32xf32, #tpu.memory_space<vmem>>, vector<8x32xf32>,
    } else {
    }
    return
  }
  func.func @transform_0(%arg0: i32, %arg1: i32) -> (i32, i32) {
    %c0_i32 = arith.constant 0 : i32
    return %arg0, %arg1 : i32, i32
  }
  func.func @transform_1(%arg0: i32, %arg1: i32) -> (i32, i32) {
    %c0_i32 = arith.constant 0 : i32
    %c0_i32_0 = arith.constant 0 : i32
    return %c0_i32, %arg1 : i32, i32
  }
  func.func @transform_2(%arg0: i32, %arg1: i32) -> (i32, i32) {
    %c0_i32 = arith.constant 0 : i32
    %c0_i32_0 = arith.constant 0 : i32
    %c0_i32_1 = arith.constant 0 : i32
    return %c0_i32, %c0_i32_0 : i32, i32
  }
  func.func @transform_3(%arg0: i32, %arg1: i32) -> (i32, i32) {
    %c0_i32 = arith.constant 0 : i32
    %c0_i32_0 = arith.constant 0 : i32
    return %arg0, %c0_i32 : i32, i32
  }
}

</mosaic_0001>

<bundles_post_ra>
// kernel: tpu_custom_call.1
= control target key start
LH: loop header
LB: loop body
LE: loop exit
PB: predicated region body
PF: predicated region fallthrough
CT: control target
= control target key end

     0   :  { %8 = vsyncpa [#allocation4], 0  ;;  %s289_s0 = inlined_call_operand.hbm [shape: bf16[8,256], index: 0, kind: input, shape index: {}]   ;;  %s290_s1 = inlined_call_operand.hbm [shape: bf16[32,256], index: 1, kind: input, shape index: {}]   ;;  %s291_s2 = inlined_call_operand.vmem [shape: f32[1,32], index: 2, kind: input, shape index: {}]   ;;  %s292_s3 = inlined_call_operand.hbm [shape: f32[8,32], index: 3, kind: output, shape index: {}]  }
   0x1   :  { %9 = vsyncpa [#allocation7], 0 }
   0x2   :  { %10 = vsyncpa [#allocation5], 0  ;;  %s16_s14 = sshll.u32 %s289_s0, 4  ;;  %s248_s15 = smov [#allocation3]   ;;  %s17_s14 = int_to_ptr.hbm [resolvable:$true] %s16_s14 }
   0x3   :  { %s18_s16 = sshll.u32 %s248_s15, 4  ;;  %s26_s19 = sshll.u32 %s290_s1, 4  ;;  %s19_s16 = int_to_ptr.vmem [resolvable:$true] %s18_s16  ;;  %s27_s19 = int_to_ptr.hbm [resolvable:$true] %s26_s19 }
   0x4   :  { %21 = dma.hbm_to_vmem [thread:$0]  %s17_s14, 128, %s19_s16, [#allocation4]  }
   0x5   :  { %s249_s20 = smov [#allocation6]   ;;  %s250_s22 = smov 128  }
   0x6   :  { %s28_s21 = sshll.u32 %s249_s20, 4  ;;  %s251_s23 = smov 8   ;;  %s29_s21 = int_to_ptr.vmem [resolvable:$true] %s28_s21 }
   0x7   :  { %34 = dma.hbm_to_vmem [thread:$0]  %s27_s19, 512, %s29_s21, [#allocation7], %s250_s22, %s250_s22, %s251_s23  }
   0x8   :  { %242 = dma.done.wait [#allocation4], 128  }
   0x9   :  { %243 = vsyncadd [#allocation4], 4294967168 }
   0xa   :  { %244 = dma.done.wait [#allocation7], 512  }
   0xb   :  { %245 = vsyncadd [#allocation7], 4294966784  ;;  %v153_v0 = vld [vmem:[#allocation6 + $0x10] sm:$0xf]  ;;  %v162_v1 = vld [vmem:[#allocation6 + $0x14] sm:$0xf0] }
   0xc   :  { %v161_v2 = vld [vmem:[#allocation6 + $0x14] sm:$0xf]  ;;  %v154_v3 = vor.u32 %v162_v1, %v153_v0  ;;  %v155_v4 = vld [vmem:[#allocation6 + $0x18] sm:$0xf0]  ;;  %v145_v6 = vld [vmem:[#allocation6] sm:$0xf] }
   0xd   :  { %v158_v5 = vor.u32 %v161_v2, %v155_v4  ;;  %v160_v7 = vld [vmem:[#allocation6 + $0x4] sm:$0xf0]  ;;  %v159_v8 = vld [vmem:[#allocation6 + $0x4] sm:$0xf]  ;;  %v147_v9 = vld [vmem:[#allocation6 + $0x8] sm:$0xf0] }
   0xe   :  { %91 = vmatpush.bf16.xpose.msra.mxu0 %v154_v3  ;;  %v146_v10 = vor.u32 %v160_v7, %v145_v6  ;;  %v53_v11 = vld [vmem:[#allocation3] sm:$0xff]  ;;  %v150_v12 = vor.u32 %v159_v8, %v147_v9  ;;  %vm50_vm0 = vcmask 261120   ;;  %v252_v17 = vmov 0.0   ;;  %v169_v25 = vld [vmem:[%s291_s2] ss:$0 sm:$0xff]  ;;  %s253_s24 = smov [#allocation8]  }
   0xf   :  { %104 = vmatpush.bf16.xpose.msra.mxu1 %v158_v5  ;;  %v59_v13 = vunpack.c.l.b16 %v53_v11  ;;  %v60_v14 = vunpack.c.h.b16 %v53_v11  ;;  %51 = vst.msk [vmem:[#allocation2] sm:$0xff] %vm50_vm0, %v252_v17  ;;  %s130_s25 = sshll.u32 %s253_s24, 4  ;;  %s132_s28 = sshll.u32 %s292_s3, 4  ;;  %s131_s25 = int_to_ptr.vmem [resolvable:$true] %s130_s25  ;;  %s133_s28 = int_to_ptr.hbm [resolvable:$true] %s132_s28 }
  0x11   :  { %v61_v15 = vpack.c.b16 %v59_v13, %v59_v13  ;;  %v62_v16 = vpack.c.b16 %v60_v14, %v60_v14 }
  0x16   :  { %92 = vmatpush.bf16.xpose.msra.mxu0 %v146_v10  ;;  %v52_v19 = vld [vmem:[#allocation2] sm:$0xff] }
  0x17   :  { %105 = vmatpush.bf16.xpose.msra.mxu1 %v150_v12 }
  0x1d   :  { %93 = vmatmul.bf16.vlgmr.msra.gmra.mxu0 %v61_v15 }
  0x1e   :  { %106 = vmatmul.bf16.vlgmr.msra.gmra.mxu1 %v62_v16 }
  0x9a   :  { %v94_v18 = vpop.f32.mrf.mxu0 }
  0x9b   :  { %v107_v20 = vpop.f32.mrf.mxu1 }
  0x9c   :  { %v108_v21 = vadd.f32 %v107_v20, %v94_v18 }
  0x9e   :  { %v111_v22 = vadd.f32 %v108_v21, %v52_v19 }
  0xa0   :  { %113 = vst.msk [vmem:[#allocation2] sm:$0xff] %vm50_vm0, %v111_v22 }
  0xa2   :  { %v96_v23 = vpop.f32.mrf.mxu0 }
  0xa3   :  { %v109_v24 = vpop.f32.mrf.mxu1 }
  0xa7   :  { %v117_v26 = vld [vmem:[#allocation2] sm:$0xff] }
  0xa8   :  { %v122_v27 = vadd.f32 %v169_v25, %v117_v26 }
  0xaa   :  { %v123_v28 = vmul.f32 2.5, %v122_v27 }
  0xac   :  { %124 = vst.msk [vmem:[#allocation8] sm:$0xff] %vm50_vm0, %v123_v28 }
  0xad   :  { %135 = dma.vmem_to_hbm [thread:$0]  %s131_s25, 128, %s133_s28, [#allocation5]  }
  0xae   :  { %246 = dma.done.wait [#allocation5], 128  }
  0xaf   :  { %247 = vsyncadd [#allocation5], 4294967168 }
  0xb0   :  { %140 = vsyncpa [#allocation4], 1 }
  0xb1   :  { %141 = vsyncpa [#allocation7], 1 }
  0xb2   :  { %142 = vsyncpa [#allocation5], 1 }

</bundles_post_ra>
